<compile_context>
chip_gen: v6e
topology: v6e:2x2x1
jax: 0.10.0
libtpu: 0.0.40
codegen_flags: <defaults>
</compile_context>

<pallas_src>
import math
import functools

import jax
import jax.numpy as jnp
from jax.experimental import pallas as pl
from jax.experimental.pallas import tpu as pltpu


# ---------------------------------------------------------------------------
# Hardware / tiling helpers
# ---------------------------------------------------------------------------
def _vmem_capacity_bytes():
    try:
        return int(pltpu.get_tpu_info().vmem_capacity_bytes)
    except Exception:
        return 64 * 1024 * 1024          # conservative (v7x per-TC VMEM)


def _const_block_spec(shape):
    """BlockSpec for a block whose index never changes (weights / biases):
    single-buffered when supported so the constant block is not needlessly
    double-buffered in VMEM."""
    index_map = lambda *_: (0,) * len(shape)
    try:
        return pl.BlockSpec(shape, index_map, pipeline_mode=pl.Buffered(1))
    except Exception:
        return pl.BlockSpec(shape, index_map)


def _pick_m_tile(M):
    if M <= 8:
        return M
    # multiple of 8, <=512 rows, and >=2 grid steps so the 'parallel' axis can
    # be sharded across the two TensorCores of a v7x chip.
    return min(512, max(8, ((M // 2) // 8) * 8))


def _pick_t_tile(T):
    if T <= 8:
        return T
    upper = min(256, ((T // 2) // 8) * 8)
    for cand in range(upper, 7, -8):      # prefer an exact multiple-of-8 divisor
        if T % cand == 0:
            return cand
    return min(256, max(8, ((T + 15) // 16) * 8))


def _pick_head_chunk(H, Dh, E):
    # Lane width of the q/k/v/out blocks is hc*Dh: keep it either the full E or
    # a 128-multiple in [128, 512] so HBM-facing stores stay lane-dense.
    if E <= 512:
        return H
    for hc in range(H, 0, -1):
        w = hc * Dh
        if H % hc == 0 and w % 128 == 0 and w <= 512:
            return hc
    return H


def _attn_vmem_bytes(bb, tq, hc, S, Dh, qkv_isize, bias_isize, has_kpm,
                     need_weights):
    w = hc * Dh
    per_buf = (2 * bb * tq * w * qkv_isize        # q block + out block
               + 2 * bb * S * w * qkv_isize       # k + v blocks
               + bb * hc * tq * S * bias_isize    # attn-bias block
               + (bb * S * 4 if has_kpm else 0)   # key-padding mask
               + (bb * tq * S * 4 if need_weights else 0))   # head-mean accum
    temps = 3 * bb * tq * S * 4                   # scores / exp / prob-accum f32
    return 2 * per_buf + temps                    # Pallas double-buffers blocks


def _pick_attention_tiles(B, T, S, H, Dh, E, qkv_isize, bias_isize, has_kpm,
                          need_weights, vmem_budget):
    hc = _pick_head_chunk(H, Dh, E)
    tq = _pick_t_tile(T)
    bb = B

    def est():
        return _attn_vmem_bytes(bb, tq, hc, S, Dh, qkv_isize, bias_isize,
                                has_kpm, need_weights)

    while est() > vmem_budget and bb > 1:
        bb = (bb + 1) // 2
    while est() > vmem_budget and tq > 8 and tq % 16 == 0:
        tq //= 2
    while est() > vmem_budget and hc > 1 and hc % 2 == 0 and \
            ((hc // 2) * Dh) % 128 == 0:
        hc //= 2
    # v7x has 2 TensorCores per chip: keep >=2 steps on a 'parallel' axis.
    if pl.cdiv(B, bb) * pl.cdiv(T, tq) < 2 and bb > 1:
        bb = (bb + 1) // 2
    return bb, tq, hc


# ---------------------------------------------------------------------------
# Kernel 1: fused Q/K/V projection.
#   x:(bm, E), w:(E, 3E) bf16 (q|k|v columns, scaling folded into q), b:(1, 3E)
# ---------------------------------------------------------------------------
def _qkv_proj_kernel(x_ref, w_ref, b_ref, q_ref, k_ref, v_ref):
    x = x_ref[...].astype(w_ref.dtype)
    E = q_ref.shape[-1]
    # Slab-by-slab so only one (bm, E) f32 accumulator is live at a time.
    for j, o_ref in enumerate((q_ref, k_ref, v_ref)):
        acc = jnp.dot(x, w_ref[:, j * E:(j + 1) * E],
                      preferred_element_type=jnp.float32)
        o_ref[...] = (acc + b_ref[:, j * E:(j + 1) * E]).astype(o_ref.dtype)


# ---------------------------------------------------------------------------
# Kernel 2: attention core (batch-major layout, leading-batch MXU einsums).
#   q block    : (bb, tq, hc*Dh)
#   k/v blocks : (bb, S,  hc*Dh)
#   bias block : (bb, hc, tq, S)   (optional)
#   kpm block  : (bb, 1, S)        (optional)
#   out block  : (bb, tq, hc*Dh)
#   wsum block : (bb, tq, S) f32   (optional; resident across the head axis)
# ---------------------------------------------------------------------------
def _attn_kernel(*refs, head_chunk, head_dim, num_heads,
                 has_bias, has_kpm, need_weights):
    it = iter(refs)
    q_ref = next(it)
    k_ref = next(it)
    v_ref = next(it)
    bias_ref = next(it) if has_bias else None
    kpm_ref = next(it) if has_kpm else None
    out_ref = next(it)
    wsum_ref = next(it) if need_weights else None

    Hc, Dh = head_chunk, head_dim

    if need_weights:
        h_blk = pl.program_id(2)

        @pl.when(h_blk == 0)
        def _init():
            wsum_ref[...] = jnp.zeros_like(wsum_ref)

    pad = (kpm_ref[...] > 0.0) if has_kpm else None        # (bb, 1, S)

    w_acc = None
    for hh in range(Hc):
        sl = slice(hh * Dh, (hh + 1) * Dh)
        q_h = q_ref[:, :, sl]                              # (bb, tq, Dh)
        k_h = k_ref[:, :, sl]                              # (bb, S,  Dh)
        # Leading-batch contraction on Dh: no K transpose, batched over bb,
        # fp32 accumulation on the MXU.
        s = jnp.einsum("bqd,bkd->bqk", q_h, k_h,
                       preferred_element_type=jnp.float32)  # (bb, tq, S)
        if has_bias:
            s = s + bias_ref[:, hh, :, :].astype(jnp.float32)
        if has_kpm:
            # masked_fill(-inf); fully-padded rows give NaN exactly like the
            # PyTorch reference path.
            s = jnp.where(pad, -jnp.inf, s)
        # softmax in float32 (matches F.softmax(..., dtype=torch.float32))
        m = jnp.max(s, axis=-1, keepdims=True)
        e = jnp.exp(s - m)
        p = e / jnp.sum(e, axis=-1, keepdims=True)          # (bb, tq, S) fp32
        if need_weights:
            w_acc = p if w_acc is None else w_acc + p
        # dropout(p=0.0) == identity; write this head's lane slice immediately
        # (no per-head lists / stack / concat epilogue).
        v_h = v_ref[:, :, sl]                               # (bb, S, Dh)
        out_ref[:, :, sl] = jnp.einsum(
            "bqk,bkd->bqd", p.astype(v_h.dtype), v_h,
            preferred_element_type=jnp.float32).astype(out_ref.dtype)

    if need_weights:
        wsum_ref[...] += w_acc                              # reduce over chunks

        @pl.when(h_blk == pl.num_programs(2) - 1)
        def _finalize():
            wsum_ref[...] = wsum_ref[...] * (1.0 / num_heads)   # mean over heads


# ---------------------------------------------------------------------------
# Kernel 3: output projection.  x:(bm, E), w:(E, E) bf16 pre-transposed, b:(1,E)
# ---------------------------------------------------------------------------
def _out_proj_kernel(x_ref, w_ref, b_ref, o_ref):
    acc = jnp.dot(x_ref[...].astype(w_ref.dtype), w_ref[...],
                  preferred_element_type=jnp.float32)
    o_ref[...] = (acc + b_ref[...]).astype(o_ref.dtype)


# ---------------------------------------------------------------------------
# One-time parameter preparation (done outside the per-call hot path).
# ---------------------------------------------------------------------------
def prepare_weights(params, num_heads, mxu_dtype=jnp.bfloat16):
    """Fuse q/k/v projections into a single (E, 3E) matrix, fold the
    1/sqrt(head_dim) query scaling into the q columns, and cast MXU operands
    (bf16 by default; pass jnp.float32 for exact fp32 matmuls).  Biases stay
    float32 and are added after the fp32 accumulation."""
    E = params["q_w"].shape[0]
    scaling = (E // num_heads) ** -0.5
    w_qkv = jnp.concatenate(
        [(params["q_w"] * scaling).T, params["k_w"].T, params["v_w"].T],
        axis=1).astype(mxu_dtype)                                    # (E, 3E)
    b_qkv = jnp.concatenate(
        [params["q_b"] * scaling, params["k_b"], params["v_b"]]
    ).reshape(1, 3 * E).astype(jnp.float32)
    return {
        "w_qkv": w_qkv,
        "b_qkv": b_qkv,
        "w_out": params["out_w"].T.astype(mxu_dtype),                # (E, E)
        "b_out": params["out_b"].reshape(1, E).astype(jnp.float32),
    }


# ---------------------------------------------------------------------------
# Wrapper reproducing MultiheadAttention.forward (self-attention path,
# attn_mask=None, before_softmax=False, need_head_weights=False).
# ---------------------------------------------------------------------------
def multihead_attention(query, attn_bias, key_padding_mask, weights, num_heads,
                        need_weights=True):
    T, B, E = query.shape
    H = num_heads
    assert E % H == 0
    Dh = E // H
    S = T
    M = B * T
    in_dtype = query.dtype
    mxu_dtype = weights["w_qkv"].dtype

    vmem_cap = _vmem_capacity_bytes()
    vmem_limit = (vmem_cap * 3) // 4

    # --- (T, B, E) -> batch-major (B, T, E), flat (M, E) --------------------
    # One XLA transpose of the input so that every in-kernel matmul is a
    # leading-batch einsum on the MXU (PyTorch re-layouts q, k and v instead).
    x2d = jnp.transpose(query, (1, 0, 2)).reshape(M, E)

    # --- fused Q/K/V projection (Pallas), M-tiled parallel grid -------------
    bm = _pick_m_tile(M)
    grid_m = pl.cdiv(M, bm)
    q2d, k2d, v2d = pl.pallas_call(
        _qkv_proj_kernel,
        out_shape=(jax.ShapeDtypeStruct((M, E), mxu_dtype),) * 3,
        grid_spec=pltpu.PrefetchScalarGridSpec(
            num_scalar_prefetch=0,
            grid=(grid_m,),
            in_specs=[
                pl.BlockSpec((bm, E), lambda i: (i, 0)),
                _const_block_spec((E, 3 * E)),
                _const_block_spec((1, 3 * E)),
            ],
            out_specs=[pl.BlockSpec((bm, E), lambda i: (i, 0))] * 3,
        ),
        compiler_params=pltpu.CompilerParams(
            dimension_semantics=("parallel",),
            vmem_limit_bytes=vmem_limit),
    )(x2d, weights["w_qkv"], weights["b_qkv"])

    q3 = q2d.reshape(B, T, E)        # free reshapes (rows already (b, t) order)
    k3 = k2d.reshape(B, T, E)
    v3 = v2d.reshape(B, T, E)

    # --- attention core (Pallas) ---------------------------------------------
    has_bias = attn_bias is not None
    has_kpm = key_padding_mask is not None
    bias_isize = jnp.dtype(attn_bias.dtype).itemsize if has_bias else 0
    bb, tq, hc = _pick_attention_tiles(
        B, T, S, H, Dh, E,
        qkv_isize=jnp.dtype(mxu_dtype).itemsize,
        bias_isize=bias_isize, has_kpm=has_kpm, need_weights=need_weights,
        vmem_budget=vmem_cap // 2)
    n_b, n_t, n_h = pl.cdiv(B, bb), pl.cdiv(T, tq), H // hc

    # TODO(synk): for very long S the (tq, S) fp32 score block should be S-tiled
    #             with an online/flash softmax; S is kept whole per step here
    #             (fine for Graphormer-scale graphs).

    if need_weights:
        # Head axis innermost + 'arbitrary': the head-mean accumulator block
        # stays resident in VMEM across the head-chunk reduction.
        grid = (n_b, n_t, n_h)
        q_idx = lambda b, t, h: (b, t, h)
        kv_idx = lambda b, t, h: (b, 0, h)
        bias_idx = lambda b, t, h: (b, h, t, 0)
        kpm_idx = lambda b, t, h: (b, 0, 0)
        w_idx = lambda b, t, h: (b, t, 0)
        semantics = ("parallel", "parallel", "arbitrary")
    else:
        # Fast path: T-tiles innermost so the K/V blocks (index only depends on
        # (b, h)) stay resident instead of being re-DMA'd for every T tile.
        grid = (n_b, n_h, n_t)
        q_idx = lambda b, h, t: (b, t, h)
        kv_idx = lambda b, h, t: (b, 0, h)
        bias_idx = lambda b, h, t: (b, h, t, 0)
        kpm_idx = lambda b, h, t: (b, 0, 0)
        w_idx = None
        semantics = ("parallel", "arbitrary", "arbitrary")

    in_arrays = [q3, k3, v3]
    in_specs = [
        pl.BlockSpec((bb, tq, hc * Dh), q_idx),
        pl.BlockSpec((bb, S, hc * Dh), kv_idx),
        pl.BlockSpec((bb, S, hc * Dh), kv_idx),
    ]
    if has_bias:
        in_arrays.append(attn_bias.reshape(B, H, T, S))
        in_specs.append(pl.BlockSpec((bb, hc, tq, S), bias_idx))
    if has_kpm:
        in_arrays.append(key_padding_mask.astype(jnp.float32).reshape(B, 1, S))
        in_specs.append(pl.BlockSpec((bb, 1, S), kpm_idx))

    out_shapes = [jax.ShapeDtypeStruct((B, T, E), mxu_dtype)]
    out_specs = [pl.BlockSpec((bb, tq, hc * Dh), q_idx)]
    if need_weights:
        out_shapes.append(jax.ShapeDtypeStruct((B, T, S), jnp.float32))
        out_specs.append(pl.BlockSpec((bb, tq, S), w_idx))

    kernel = functools.partial(
        _attn_kernel, head_chunk=hc, head_dim=Dh, num_heads=H,
        has_bias=has_bias, has_kpm=has_kpm, need_weights=need_weights)

    outs = pl.pallas_call(
        kernel,
        out_shape=tuple(out_shapes),
        grid_spec=pltpu.PrefetchScalarGridSpec(
            num_scalar_prefetch=0,
            grid=grid,
            in_specs=in_specs,
            out_specs=out_specs,
        ),
        compiler_params=pltpu.CompilerParams(
            dimension_semantics=semantics,
            vmem_limit_bytes=vmem_limit),
    )(*in_arrays)

    if need_weights:
        attn_bte, attn_weights = outs
    else:
        attn_bte, attn_weights = outs[0], None

    # --- output projection (Pallas), M-tiled parallel grid ------------------
    out2d = pl.pallas_call(
        _out_proj_kernel,
        out_shape=jax.ShapeDtypeStruct((M, E), in_dtype),
        grid_spec=pltpu.PrefetchScalarGridSpec(
            num_scalar_prefetch=0,
            grid=(grid_m,),
            in_specs=[
                pl.BlockSpec((bm, E), lambda i: (i, 0)),
                _const_block_spec((E, E)),
                _const_block_spec((1, E)),
            ],
            out_specs=pl.BlockSpec((bm, E), lambda i: (i, 0)),
        ),
        compiler_params=pltpu.CompilerParams(
            dimension_semantics=("parallel",),
            vmem_limit_bytes=vmem_limit),
    )(attn_bte.reshape(M, E), weights["w_out"], weights["b_out"])

    # batch-major -> module layout (T, B, E): one XLA transpose of one array.
    out_tbe = jnp.transpose(out2d.reshape(B, T, E), (1, 0, 2))
    return out_tbe, attn_weights


# ---------------------------------------------------------------------------
# Pure-JAX fp32 reference of the same forward pass (sanity check).
# ---------------------------------------------------------------------------
def _reference(query, attn_bias, key_padding_mask, params, num_heads):
    T, B, E = query.shape
    H = num_heads
    Dh = E // H
    S = T
    scaling = Dh ** -0.5
    x = query.reshape(T * B, E)
    q = (x @ params["q_w"].T + params["q_b"]) * scaling
    k = x @ params["k_w"].T + params["k_b"]
    v = x @ params["v_w"].T + params["v_b"]
    q = q.reshape(T, B * H, Dh).transpose(1, 0, 2)
    k = k.reshape(T, B * H, Dh).transpose(1, 0, 2)
    v = v.reshape(T, B * H, Dh).transpose(1, 0, 2)
    w = jnp.einsum("bqd,bkd->bqk", q, k)
    if attn_bias is not None:
        w = w + attn_bias.reshape(B * H, T, S)
    if key_padding_mask is not None:
        mask = key_padding_mask.reshape(B, 1, 1, S)
        w = jnp.where(mask, -jnp.inf, w.reshape(B, H, T, S)).reshape(B * H, T, S)
    wf = jax.nn.softmax(w.astype(jnp.float32), axis=-1)
    attn = jnp.einsum("bqk,bkd->bqd", wf.astype(v.dtype), v)
    attn = attn.transpose(1, 0, 2).reshape(T, B, E)
    out = attn @ params["out_w"].T + params["out_b"]
    wmean = wf.reshape(B, H, T, S).mean(axis=1)
    return out, wmean


# ---------------------------------------------------------------------------
# Deterministic parameter construction (matches reset_parameters for the
# qkv_same_dim self-attention case).
# ---------------------------------------------------------------------------
def make_params(key, embed_dim):
    def xavier_uniform(k, shape, gain=1.0):
        fan_out, fan_in = shape
        a = gain * math.sqrt(6.0 / (fan_in + fan_out))
        return jax.random.uniform(k, shape, jnp.float32, -a, a)

    def linear_bias(k, fan_in, dim):
        bound = 1.0 / math.sqrt(fan_in)
        return jax.random.uniform(k, (dim,), jnp.float32, -bound, bound)

    ks = jax.random.split(key, 7)
    g = 1.0 / math.sqrt(2.0)
    E = embed_dim
    return {
        "q_w": xavier_uniform(ks[0], (E, E), gain=g),
        "k_w": xavier_uniform(ks[1], (E, E), gain=g),
        "v_w": xavier_uniform(ks[2], (E, E), gain=g),
        "out_w": xavier_uniform(ks[3], (E, E), gain=1.0),
        "q_b": linear_bias(ks[4], E, E),
        "k_b": linear_bias(ks[5], E, E),
        "v_b": linear_bias(ks[6], E, E),
        "out_b": jnp.zeros((E,), jnp.float32),   # nn.init.constant_(0.0)
    }


if __name__ == "__main__":
    tgt_len, bsz, embed_dim, num_heads = 8, 2, 32, 4

    root = jax.random.PRNGKey(0)
    k_x, k_b, k_p = jax.random.split(root, 3)

    query = jax.random.normal(k_x, (tgt_len, bsz, embed_dim), jnp.float32)
    attn_bias = jax.random.normal(
        k_b, (bsz * num_heads, tgt_len, tgt_len), jnp.float32)
    # pad out the last two key positions of the second batch element
    key_padding_mask = jnp.zeros((bsz, tgt_len), jnp.bool_).at[1, 6:].set(True)

    params = make_params(k_p, embed_dim)
    weights = prepare_weights(params, num_heads)      # bf16 MXU operands

    attn, attn_weights = multihead_attention(
        query, attn_bias, key_padding_mask, weights, num_heads,
        need_weights=True)
    jax.block_until_ready((attn, attn_weights))

    assert attn.shape == (tgt_len, bsz, embed_dim)
    assert attn_weights.shape == (bsz, tgt_len, tgt_len)

    # sanity check against a fp32 plain-JAX reference (bf16 MXU tolerance)
    ref_out, ref_w = _reference(query, attn_bias, key_padding_mask,
                                params, num_heads)
    assert bool(jnp.allclose(attn, ref_out, rtol=2e-2, atol=2e-2))
    assert bool(jnp.allclose(attn_weights, ref_w, rtol=2e-2, atol=2e-2))

    # exercise the no-weights fast path (K/V-resident grid order) as well
    attn2, w2 = multihead_attention(
        query, attn_bias, key_padding_mask, weights, num_heads,
        need_weights=False)
    jax.block_until_ready(attn2)
    assert w2 is None
    assert bool(jnp.allclose(attn2, ref_out, rtol=2e-2, atol=2e-2))

    print("KERNEL_OK")
</pallas_src>

<mosaic_0001>
module attributes {stable_mosaic.version = 11 : i64} {
  func.func @_qkv_proj_kernel(%arg0: i32, %arg1: memref<8x32xf32, #tpu.memory_space<vmem>>, %arg2: memref<32x96xbf16, #tpu.memory_space<vmem>>, %arg3: memref<1x96xf32, #tpu.memory_space<vmem>>, %arg4: memref<8x32xbf16, #tpu.memory_space<vmem>>, %arg5: memref<8x32xbf16, #tpu.memory_space<vmem>>, %arg6: memref<8x32xbf16, #tpu.memory_space<vmem>>) attributes {dimension_semantics = [#tpu.dimension_semantics<parallel>], iteration_bounds = array<i64: 2>, scalar_prefetch = 0 : i64, scratch_operands = 0 : i64, tpu.core_type = #tpu.core_type<tc>, window_params = [{transform_indices = @transform_0, window_bounds = array<i64: 8, 32>}, {pipeline_mode = #tpu.pipeline_mode<synchronous>, transform_indices = @transform_1, window_bounds = array<i64: 32, 96>}, {pipeline_mode = #tpu.pipeline_mode<synchronous>, transform_indices = @transform_2, window_bounds = array<i64: 1, 96>}, {transform_indices = @transform_3, window_bounds = array<i64: 8, 32>}, {transform_indices = @transform_4, window_bounds = array<i64: 8, 32>}, {transform_indices = @transform_5, window_bounds = array<i64: 8, 32>}]} {
    %c0 = arith.constant 0 : index
    %c0_0 = arith.constant 0 : index
    %0 = vector.load %arg1[%c0, %c0_0] : memref<8x32xf32, #tpu.memory_space<vmem>>, vector<8x32xf32>
    %1 = arith.truncf %0 : vector<8x32xf32> to vector<8x32xbf16>
    %c0_1 = arith.constant 0 : index
    %c0_2 = arith.constant 0 : index
    %2 = vector.load %arg2[%c0_1, %c0_2] : memref<32x96xbf16, #tpu.memory_space<vmem>>, vector<32x32xbf16>
    %cst = arith.constant dense<0.000000e+00> : vector<8x32xf32>
    %3 = tpu.matmul %1, %2, %cst {dimension_numbers = #tpu.dot_dimension_numbers<[1], [0], [0], [1], [0, 0, 1, 1], [], []>} : vector<8x32xbf16>, vector<32x32xbf16>, vector<8x32xf32> -> vector<8x32xf32>
    %c0_3 = arith.constant 0 : index
    %c0_4 = arith.constant 0 : index
    %4 = vector.load %arg3[%c0_3, %c0_4] : memref<1x96xf32, #tpu.memory_space<vmem>>, vector<1x32xf32>
    %5 = vector.broadcast %4 : vector<1x32xf32> to vector<8x32xf32>
    %6 = arith.addf %3, %5 : vector<8x32xf32>
    %7 = arith.truncf %6 : vector<8x32xf32> to vector<8x32xbf16>
    %c0_5 = arith.constant 0 : index
    %c0_6 = arith.constant 0 : index
    %8 = vector.load %arg4[%c0_5, %c0_6] : memref<8x32xbf16, #tpu.memory_space<vmem>>, vector<8x32xbf16>
    tpu.vector_store %arg4[%c0_5, %c0_6], %7 {strides = array<i32>} : memref<8x32xbf16, #tpu.memory_space<vmem>>, vector<8x32xbf16>,
    %c0_7 = arith.constant 0 : index
    %c32 = arith.constant 32 : index
    %9 = vector.load %arg2[%c0_7, %c32] : memref<32x96xbf16, #tpu.memory_space<vmem>>, vector<32x32xbf16>
    %cst_8 = arith.constant dense<0.000000e+00> : vector<8x32xf32>
    %10 = tpu.matmul %1, %9, %cst_8 {dimension_numbers = #tpu.dot_dimension_numbers<[1], [0], [0], [1], [0, 0, 1, 1], [], []>} : vector<8x32xbf16>, vector<32x32xbf16>, vector<8x32xf32> -> vector<8x32xf32>
    %c0_9 = arith.constant 0 : index
    %c32_10 = arith.constant 32 : index
    %11 = vector.load %arg3[%c0_9, %c32_10] : memref<1x96xf32, #tpu.memory_space<vmem>>, vector<1x32xf32>
    %12 = vector.broadcast %11 : vector<1x32xf32> to vector<8x32xf32>
    %13 = arith.addf %10, %12 : vector<8x32xf32>
    %14 = arith.truncf %13 : vector<8x32xf32> to vector<8x32xbf16>
    %c0_11 = arith.constant 0 : index
    %c0_12 = arith.constant 0 : index
    %15 = vector.load %arg5[%c0_11, %c0_12] : memref<8x32xbf16, #tpu.memory_space<vmem>>, vector<8x32xbf16>
    tpu.vector_store %arg5[%c0_11, %c0_12], %14 {strides = array<i32>} : memref<8x32xbf16, #tpu.memory_space<vmem>>, vector<8x32xbf16>,
    %c0_13 = arith.constant 0 : index
    %c64 = arith.constant 64 : index
    %16 = vector.load %arg2[%c0_13, %c64] : memref<32x96xbf16, #tpu.memory_space<vmem>>, vector<32x32xbf16>
    %cst_14 = arith.constant dense<0.000000e+00> : vector<8x32xf32>
    %17 = tpu.matmul %1, %16, %cst_14 {dimension_numbers = #tpu.dot_dimension_numbers<[1], [0], [0], [1], [0, 0, 1, 1], [], []>} : vector<8x32xbf16>, vector<32x32xbf16>, vector<8x32xf32> -> vector<8x32xf32>
    %c0_15 = arith.constant 0 : index
    %c64_16 = arith.constant 64 : index
    %18 = vector.load %arg3[%c0_15, %c64_16] : memref<1x96xf32, #tpu.memory_space<vmem>>, vector<1x32xf32>
    %19 = vector.broadcast %18 : vector<1x32xf32> to vector<8x32xf32>
    %20 = arith.addf %17, %19 : vector<8x32xf32>
    %21 = arith.truncf %20 : vector<8x32xf32> to vector<8x32xbf16>
    %c0_17 = arith.constant 0 : index
    %c0_18 = arith.constant 0 : index
    %22 = vector.load %arg6[%c0_17, %c0_18] : memref<8x32xbf16, #tpu.memory_space<vmem>>, vector<8x32xbf16>
    tpu.vector_store %arg6[%c0_17, %c0_18], %21 {strides = array<i32>} : memref<8x32xbf16, #tpu.memory_space<vmem>>, vector<8x32xbf16>,
    return
  }
  func.func @transform_0(%arg0: i32) -> (i32, i32) {
    %c0_i32 = arith.constant 0 : i32
    %c0_i32_0 = arith.constant 0 : i32
    return %arg0, %c0_i32 : i32, i32
  }
  func.func @transform_1(%arg0: i32) -> (i32, i32) {
    %c0_i32 = arith.constant 0 : i32
    %c0_i32_0 = arith.constant 0 : i32
    %c0_i32_1 = arith.constant 0 : i32
    return %c0_i32, %c0_i32_0 : i32, i32
  }
  func.func @transform_2(%arg0: i32) -> (i32, i32) {
    %c0_i32 = arith.constant 0 : i32
    %c0_i32_0 = arith.constant 0 : i32
    %c0_i32_1 = arith.constant 0 : i32
    return %c0_i32, %c0_i32_0 : i32, i32
  }
  func.func @transform_3(%arg0: i32) -> (i32, i32) {
    %c0_i32 = arith.constant 0 : i32
    %c0_i32_0 = arith.constant 0 : i32
    return %arg0, %c0_i32 : i32, i32
  }
  func.func @transform_4(%arg0: i32) -> (i32, i32) {
    %c0_i32 = arith.constant 0 : i32
    %c0_i32_0 = arith.constant 0 : i32
    return %arg0, %c0_i32 : i32, i32
  }
  func.func @transform_5(%arg0: i32) -> (i32, i32) {
    %c0_i32 = arith.constant 0 : i32
    %c0_i32_0 = arith.constant 0 : i32
    return %arg0, %c0_i32 : i32, i32
  }
}

</mosaic_0001>

<bundles_post_ra>
// kernel: tpu_custom_call.1
= control target key start
LH: loop header
LB: loop body
LE: loop exit
PB: predicated region body
PF: predicated region fallthrough
CT: control target
= control target key end

     0   :  { %11 = vsyncpa [#allocation3], 0  ;;  %s1297_s0 = inlined_call_operand.hbm [shape: f32[16,32], index: 0, kind: input, shape index: {}]   ;;  %s1298_s1 = inlined_call_operand.hbm [shape: bf16[32,96], index: 1, kind: input, shape index: {}]   ;;  %s1299_s2 = inlined_call_operand.vmem [shape: f32[1,96], index: 2, kind: input, shape index: {}]   ;;  %s1300_s3 = inlined_call_operand.hbm [shape: bf16[16,32], index: 3, kind: output, shape index: {0}]   ;;  %s1301_s4 = inlined_call_operand.hbm [shape: bf16[16,32], index: 4, kind: output, shape index: {1}]   ;;  %s1302_s5 = inlined_call_operand.hbm [shape: bf16[16,32], index: 5, kind: output, shape index: {2}]  }
   0x1   :  { %13 = vsyncpa [#allocation3 + $0x1], 0 }
   0x2   :  { %14 = vsyncpa [#allocation6], 0 }
   0x3   :  { %15 = vsyncpa [#allocation4], 0 }
   0x4   :  { %17 = vsyncpa [#allocation4 + $0x1], 0 }
   0x5   :  { %18 = vsyncpa [#allocation9], 0 }
   0x6   :  { %20 = vsyncpa [#allocation9 + $0x1], 0  ;;  %s1044_s18 = smov 0   ;;  %s1046_s19 = smov 0  }
   0x7   :  { %s1048_s20 = smov 0   ;;  %s1050_s21 = smov 0  }
   0x8 LB: > { %s1065_s22 = sadd.s32 4294967295, %s1001_s21   ;;  %s1305_s23 = sadd.s32 4294967294, %s1001_s21   ;;  %s1001_s21 = sphi %s1050_s21, %s1326_s21   ;;  %s997_s20 = sphi %s1048_s20, %s1325_s20   ;;  %s993_s19 = sphi %s1046_s19, %s1324_s19   ;;  %s989_s18 = sphi %s1044_s18, %s1323_s18  }
   0x9   : > { %p46_p0 = scmp.ne.s32.totalorder %s993_s19, %s989_s18  ;;  %p1303_p1 = scmp.eq.s32.totalorder %s1065_s22, 0 }
   0xa   : > { %p118_p3 = scmp.eq.s32.totalorder %s1305_s23, 1  ;;  %p680_p5 = scmp.ge.s32.totalorder %s1001_s21, 1 }
   0xb   : > { %p1076_p4 = por %p1303_p1, %p46_p0  ;;  %p177_p7 = scmp.lt.s32.totalorder %s1001_s21, 3 }
   0xc   : > { %p1081_p6 = por %p118_p3, %p46_p0  ;;  %s1003_s27 = smov [#allocation5]  }
   0xd   : > { %s1308_s24 = scalar_select %p1076_p4, 1, 0 }
   0xe   : > { %s1309_s25 = scalar_select %p1081_p6, 1, 0 }
   0xf   : > { %p1086_p8 = pnand %p680_p5, %p177_p7  ;;  %s189_s28 = sshll.u32 %s1003_s27, 4  ;;  %s190_s28 = int_to_ptr.vmem [resolvable:$true] %s189_s28 }
  0x10   : > { %s1100_s30 = sadd.s32 1, %s1001_s21   ;;  %s33_s6 = sadd.s32 1, %s997_s20 }
  0x11   : > { %s1310_s26 = scalar_select %p1086_p8, 1, 0 }
  0x12   : > { %p756_p9 = pneg %p1086_p8  ;;  %s30_s7 = ssub.s32 %s1001_s21, %s1100_s30 }
  0x13   : > { %s834_s8 = scalar_lea.vmem %s190_s28, 256  ;;  %p842_p5 = scmp.lt.s32.totalorder %s190_s28, %s190_s28 }
  0x14   : > { %p1095_p11 = pnand %p756_p9, %p1303_p1  ;;  %p835_p13 = scmp.ne.s32.totalorder %s190_s28, %s834_s8 }
  0x15   : > { %p843_p7 = scmp.lt.s32.totalorder %s834_s8, %s834_s8 }
  0x16   : > { %p825_p12 = pneg %p1095_p11 }
  0x17   : > { %p844_p10 = por %p843_p7, %p842_p5 }
  0x18   : > { %p837_p0 = pnand %p835_p13, %p825_p12 }
  0x1a   : > { %p838_p3 = pneg %p837_p0 }
  0x1c   : > { %p845_p2 = pnand %p844_p10, %p838_p3 }
  0x1e   : > { %848 = shalt.err (!%p845_p2)
}
  0x1f   : > { %s1004_s9 = smov 64   ;;  %s1005_s10 = smov 4  }
  0x20   : > { %759 = dma.hbm_to_vmem [thread:$0]  (!%p1095_p11), %s1298_s1, 256, %s190_s28, [#allocation6], %s1004_s9, %s1004_s9, %s1005_s10  }
  0x21   : > { %p31_p9 = scmp.eq.s32.totalorder %s30_s7, 0  ;;  %p40_p12 = scmp.ne.s32.totalorder %s997_s20, %s993_s19 }
  0x22   : > { %p41_p10 = scmp.eq.s32.totalorder %s1001_s21, 0  ;;  %p775_p2 = scmp.lt.s32.totalorder %s1001_s21, 2 }
  0x23   : > { %s1117_s13 = scalar_select %p31_p9, %s997_s20, %s33_s6  }
  0x24   : > { %p42_p13 = por %p41_p10, %p40_p12  ;;  %p1312_p0 = scmp.eq.s32.totalorder %s1065_s22, 1 }
  0x25   : > { %s206_s15 = sand.u32 1, %s997_s20   ;;  %s684_s16 = sshll.u32 %s1001_s21, 7 }
  0x26   : > { %p1121_p3 = por %p1312_p0, %p40_p12  ;;  %s683_s17 = sshll.u32 %s206_s15, 3 }
  0x27   : > { %s1130_s8 = scalar_lea.hbm %s1297_s0, %s684_s16  ;;  %s210_s28 = scalar_lea.vmem [#allocation2], %s683_s17 }
  0x28   : > { %s1313_s14 = scalar_select %p1121_p3, 1, 0 }
  0x29   : > { %s217_s6 = sshll.u32 %s210_s28, 4  ;;  %p1132_p11 = pnand %p775_p2, %p42_p13  ;;  %s218_s6 = int_to_ptr.vmem [resolvable:$true] %s217_s6 }
  0x2a   : > { %s207_s9 = scalar_lea.sflag [#allocation3], %s206_s15  ;;  %s849_s10 = scalar_lea.hbm %s1130_s8, 128 }
  0x2b   : > { %p850_p5 = scmp.ne.s32.totalorder %s1130_s8, %s849_s10  ;;  %p851_p7 = pneg %p1132_p11 }
  0x2c   : > { %s854_s16 = scalar_lea.hbm %s1297_s0, 256  ;;  %p855_p10 = scmp.lt.s32.totalorder %s1130_s8, %s1297_s0 }
  0x2d   : > { %p852_p9 = pnand %p851_p7, %p850_p5  ;;  %p856_p2 = scmp.lt.s32.totalorder %s854_s16, %s849_s10 }
  0x2f   : > { %p853_p12 = pneg %p852_p9  ;;  %p857_p13 = por %p856_p2, %p855_p10 }
  0x31   : > { %p858_p0 = pnand %p857_p13, %p853_p12 }
  0x33   : > { %861 = shalt.err (!%p858_p0)
}
  0x34   : > { %s862_s29 = scalar_lea.vmem %s218_s6, 128  ;;  %s1006_s15 = smov [#allocation2]  }
  0x35   : > { %p863_p1 = scmp.ne.s32.totalorder %s218_s6, %s862_s29  ;;  %s867_s28 = sshll.u32 %s1006_s15, 4  ;;  %s868_s28 = int_to_ptr.vmem [resolvable:$false] %s867_s28 }
  0x36   : > { %s869_s23 = scalar_lea.vmem %s868_s28, 256  ;;  %p870_p5 = scmp.lt.s32.totalorder %s218_s6, %s868_s28 }
  0x37   : > { %p865_p6 = pnand %p863_p1, %p851_p7  ;;  %p871_p9 = scmp.lt.s32.totalorder %s869_s23, %s862_s29 }
  0x39   : > { %p866_p3 = pneg %p865_p6  ;;  %p872_p4 = por %p871_p9, %p870_p5 }
  0x3b   : > { %p873_p8 = pnand %p872_p4, %p866_p3 }
  0x3d   : > { %876 = shalt.err (!%p873_p8)
}
  0x3e   : > { %763 = dma.hbm_to_vmem [thread:$0]  (!%p1132_p11), %s1130_s8, 128, %s218_s6, %s207_s9  }
  0x3f   : > { %p1315_p12 = scmp.ne.s32.totalorder %s1310_s26, 0 }
  0x40   : > { %s1153_s10 = sand.u32 (!%p1315_p12), 1, %s993_s19   ;;  %p1316_p1 = scmp.ne.s32.totalorder (!%p1315_p12), %s1308_s24, 0 }
  0x41   : > { %226 = sbr.rel (%p1315_p12) target bundleno = 432 (0x1b0), region = 32  ;;  %s686_s11 = sshll.u32 (!%p1315_p12), %s1153_s10, 3 }
  0x42   : > { %s229_s12 = scalar_lea.sflag (!%p1315_p12), [#allocation3], %s1153_s10  ;;  %s232_s16 = scalar_lea.vmem (!%p1315_p12), [#allocation2], %s686_s11 }
  0x46   : > { %972 = dma.done.wait (%p1316_p1), %s229_s12, 128  }
  0x47   : > { %974 = vsyncadd (%p1316_p1), %s229_s12, 4294967168  ;;  %p1317_p4 = scmp.eq.s32.totalorder %s1065_s22, 0 }
  0x49   : > { %976 = dma.done.wait (%p1317_p4), [#allocation6], 256   ;;  %p1318_p6 = pmov %p1317_p4 }
  0x4a   : > { %v1007_v0 = vmov 0.0   ;;  %vm1008_vm0 = vmmov 0   ;;  %v817_v1 = vld [vmem:[#allocation5 + $0x8] sm:$0xff]   ;;  %s1009_s23 = smov 96   ;;  %v819_v3 = vld [vmem:[#allocation5] sm:$0xff]   ;;  %s1010_s24 = smov 64  }
  0x4b   : > { %978 = vsyncadd (%p1318_p6), [#allocation6], 4294967040  ;;  %720 = vmatprep.subr.bf16.mxu0 %v1007_v0  ;;  %724 = vmatprep.mubr.msk.bf16.mxu0 %vm1008_vm0, %v1007_v0  ;;  %v818_v2 = vld [vmem:[#allocation5 + $0x8] sm:$0xff]   ;;  %v820_v4 = vld [vmem:[#allocation5] sm:$0xff]   ;;  %vm299_vm1 = vcmask 261120   ;;  %s1175_s6 = sshll.u32 %s1153_s10, 2 }
  0x4c   : > { %728 = vmatprep.subr.bf16.mxu1 %v1007_v0  ;;  %732 = vmatprep.mubr.msk.bf16.mxu1 %vm1008_vm0, %v1007_v0  ;;  %v821_v5 = vld [vmem:[#allocation5 + $0x8] sm:$0xff]   ;;  %v822_v6 = vld [vmem:[#allocation5] sm:$0xff]   ;;  %v274_v7 = vld [vmem:[%s232_s16] sm:$0xff]  ;;  %s1178_s7 = sshll.u32 %s1065_s22, 6  ;;  %s258_s9 = scalar_lea.vmem [#allocation7], %s1175_s6  ;;  %vm344_vm2 = vcmask 257024  }
  0x4d   : > { %368 = vrot.lane.b32.xlu0 %v817_v1, %s1009_s23  ;;  %366 = vrot.lane.b32.xlu1 %v819_v3, %s1009_s23  ;;  %v695_v8 = vld [vmem:[%s1299_s2] ss:$0 sm:$0xff]  ;;  %v275_v9 = vpack.c.bf16 %v274_v7, %v274_v7  ;;  %s512_s27 = sshll.u32 %s258_s9, 4  ;;  %s1185_s15 = scalar_lea.hbm %s1300_s3, %s1178_s7  ;;  %s1187_s27 = int_to_ptr.vmem [resolvable:$true] %s512_s27 }
  0x4e   : > { %721 = vmatpush3.bf16.msra.mxu0 %v821_v5  ;;  %s489_s28 = scalar_lea.sflag [#allocation4], %s1153_s10  ;;  %s877_s11 = scalar_lea.vmem %s1187_s27, 64 }
  0x4f   : > { %722 = vmatprep.subr.bf16.mxu0 %v1007_v0  ;;  %p878_p8 = scmp.ne.s32.totalorder %s1187_s27, %s877_s11  ;;  %p1319_p3 = scmp.ne.s32.totalorder %s1313_s14, 0 }
  0x50   : > { %s1011_s12 = smov [#allocation7]  }
  0x51   : > { %439 = vrot.lane.b32.xlu0 %v818_v2, %s1010_s24  ;;  %437 = vrot.lane.b32.xlu1 %v820_v4, %s1010_s24  ;;  %p879_p11 = pnand %p878_p8, %p1319_p3  ;;  %s881_s16 = sshll.u32 %s1011_s12, 4  ;;  %s882_s16 = int_to_ptr.vmem [resolvable:$false] %s881_s16 }
  0x52   : > { %723 = vmatpush3.bf16.msra.mxu0 %v822_v6  ;;  %p884_p10 = scmp.lt.s32.totalorder %s1187_s27, %s882_s16 }
  0x53   : > { %736 = vmatprep.subr.bf16.mxu0 %v1007_v0  ;;  %p880_p7 = pneg %p879_p11 }
  0x55   : > { %372 = vrot.lane.b32.xlu0 %v695_v8, %s1009_s23  ;;  %443 = vrot.lane.b32.xlu1 %v695_v8, %s1010_s24  ;;  %s883_s23 = scalar_lea.vmem %s882_s16, 128 }
  0x56   : > { %725 = vmatmul.mubr.msk.bf16.vlgmr.msra.gmra.mxu0 %vm299_vm1, %v275_v9  ;;  %p885_p2 = scmp.lt.s32.totalorder %s883_s23, %s877_s11 }
  0x57   : > { %740 = vmatprep.mubr.msk.bf16.mxu0 %vm1008_vm0, %v1007_v0 }
  0x58   : > { %p886_p13 = por %p885_p2, %p884_p10 }
  0x5a   : > { %p887_p0 = pnand %p886_p13, %p880_p7 }
  0xbf   : > { %v369_v10 = vpop.permute.xlu0 %368  ;;  %v367_v11 = vpop.permute.xlu1 %366 }
  0xc0   : > { %729 = vmatpush3.bf16.msra.mxu1 %v369_v10 }
  0xc1   : > { %730 = vmatprep.subr.bf16.mxu1 %v1007_v0 }
  0xc3   : > { %v440_v12 = vpop.permute.xlu0 %439  ;;  %v438_v13 = vpop.permute.xlu1 %437 }
  0xc4   : > { %731 = vmatpush3.bf16.msra.mxu1 %v367_v11  ;;  %737 = vmatpush3.bf16.msra.mxu0 %v440_v12 }
  0xc5   : > { %738 = vmatprep.subr.bf16.mxu0 %v1007_v0 }
  0xc7   : > { %733 = vmatmul.mubr.msk.bf16.vlgmr.msra.gmra.mxu1 %vm299_vm1, %v275_v9 }
  0xc8   : > { %739 = vmatpush3.bf16.msra.mxu0 %v438_v13 }
  0xcb   : > { %741 = vmatmul.mubr.msk.bf16.vlgmr.msra.gmra.mxu0 %vm299_vm1, %v275_v9 }
 0x116   : > { %v337_v14 = vpop.f32.mrf.mxu0 }
 0x117   : > { %v338_v15 = vadd.f32 %v695_v8, %v337_v14 }
 0x118   : > { %v726_v16 = vpop.f32.mrf.mxu0 }
 0x119   : > { %v343_v17 = vpack.c.bf16 %v338_v15, %v338_v15 }
 0x11a   : > { %v340_v18 = vpop.f32.mrf.mxu0 }
 0x11b   : > { %345 = vst.msk [vmem:[%s258_s9] sm:$0xf] %vm344_vm2, %v343_v17 }
 0x11c   : > { %v727_v19 = vpop.f32.mrf.mxu0 }
 0x11d   : > { %890 = shalt.err (!%p887_p0)
}
 0x11e   : > { %s891_s24 = scalar_lea.hbm %s1185_s15, 64  ;;  %s895_s8 = scalar_lea.hbm %s1300_s3, 128 }
 0x11f   : > { %p892_p5 = scmp.ne.s32.totalorder %s1185_s15, %s891_s24  ;;  %p896_p1 = scmp.lt.s32.totalorder %s1185_s15, %s1300_s3 }
 0x120   : > { %p897_p4 = scmp.lt.s32.totalorder %s895_s8, %s891_s24 }
 0x121   : > { %p893_p9 = pnand %p892_p5, %p1319_p3 }
 0x122   : > { %p898_p6 = por %p897_p4, %p896_p1 }
 0x123   : > { %p894_p12 = pneg %p893_p9 }
 0x125   : > { %p899_p8 = pnand %p898_p6, %p894_p12 }
 0x127   : > { %902 = shalt.err (!%p899_p8)
}
 0x128   : > { %750 = dma.vmem_to_hbm [thread:$0]  (%p1319_p3), %s1187_s27, 64, %s1185_s15, %s489_s28   ;;  %v373_v20 = vpop.permute.xlu0 %372  ;;  %v444_v24 = vpop.permute.xlu1 %443 }
 0x129   : > { %s493_s29 = sand.u32 1, %s1065_s22   ;;  %s265_s11 = scalar_lea.vmem [#allocation8], %s1175_s6 }
 0x12a   : > { %s525_s12 = sshll.u32 %s265_s11, 4  ;;  %s1217_s24 = scalar_lea.hbm %s1301_s4, %s1178_s7  ;;  %s1219_s12 = int_to_ptr.vmem [resolvable:$true] %s525_s12 }
 0x12b   : > { %s272_s22 = scalar_lea.vmem [#allocation10], %s1175_s6  ;;  %s1227_s15 = scalar_lea.sflag [#allocation9], %s493_s29 }
 0x12c   : > { %s1224_s27 = sshll.u32 %s272_s22, 4  ;;  %s903_s28 = scalar_lea.vmem %s1219_s12, 64  ;;  %s539_s27 = int_to_ptr.vmem [resolvable:$true] %s1224_s27 }
 0x12d   : > { %p904_p11 = scmp.ne.s32.totalorder %s1219_s12, %s903_s28  ;;  %s1012_s10 = smov [#allocation8]  }
 0x12e   : > { %s907_s26 = sshll.u32 %s1012_s10, 4  ;;  %s908_s26 = int_to_ptr.vmem [resolvable:$false] %s907_s26 }
 0x12f   : > { %p905_p7 = pnand %p904_p11, %p1319_p3  ;;  %s909_s8 = scalar_lea.vmem %s908_s26, 128 }
 0x130   : > { %p910_p2 = scmp.lt.s32.totalorder %s1219_s12, %s908_s26  ;;  %p911_p13 = scmp.lt.s32.totalorder %s909_s8, %s903_s28 }
 0x131   : > { %p906_p10 = pneg %p905_p7 }
 0x132   : > { %p912_p0 = por %p911_p13, %p910_p2 }
 0x134   : > { %p913_p5 = pnand %p912_p0, %p906_p10 }
 0x187   : > { %v409_v21 = vpop.f32.mrf.mxu1 }
 0x188   : > { %v410_v22 = vadd.f32 %v409_v21, %v373_v20 }
 0x189   : > { %v734_v23 = vpop.f32.mrf.mxu1 }
 0x18a   : > { %v415_v25 = vpack.c.bf16 %v410_v22, %v410_v22 }
 0x18b   : > { %v412_v26 = vpop.f32.mrf.mxu1  ;;  %v480_v27 = vpop.f32.mrf.mxu0 }
 0x18c   : > { %v481_v28 = vadd.f32 %v480_v27, %v444_v24  ;;  %416 = vst.msk [vmem:[%s265_s11] sm:$0xf] %vm344_vm2, %v415_v25 }
 0x18d   : > { %v735_v29 = vpop.f32.mrf.mxu1  ;;  %v742_v30 = vpop.f32.mrf.mxu0 }
 0x18e   : > { %916 = shalt.err (!%p913_p5)
}
 0x18f   : > { %s917_s9 = scalar_lea.hbm %s1217_s24, 64  ;;  %s921_s11 = scalar_lea.hbm %s1301_s4, 128 }
 0x190   : > { %p918_p9 = scmp.ne.s32.totalorder %s1217_s24, %s917_s9  ;;  %p922_p4 = scmp.lt.s32.totalorder %s1217_s24, %s1301_s4 }
 0x191   : > { %p923_p6 = scmp.lt.s32.totalorder %s921_s11, %s917_s9 }
 0x192   : > { %p919_p12 = pnand %p918_p9, %p1319_p3 }
 0x193   : > { %p924_p8 = por %p923_p6, %p922_p4 }
 0x194   : > { %p920_p1 = pneg %p919_p12 }
 0x196   : > { %p925_p11 = pnand %p924_p8, %p920_p1 }
 0x198   : > { %928 = shalt.err (!%p925_p11)
}
 0x199   : > { %751 = dma.vmem_to_hbm [thread:$0]  (%p1319_p3), %s1219_s12, 64, %s1217_s24, %s1227_s15   ;;  %v486_v31 = vpack.c.bf16 %v481_v28, %v481_v28  ;;  %v483_v32 = vpop.f32.mrf.mxu0 }
 0x19a   : > { %s1254_s26 = scalar_lea.hbm %s1302_s5, %s1178_s7  ;;  %s929_s8 = scalar_lea.vmem %s539_s27, 64 }
 0x19b   : > { %487 = vst.msk [vmem:[%s272_s22] sm:$0xf] %vm344_vm2, %v486_v31  ;;  %v743_v33 = vpop.f32.mrf.mxu0  ;;  %p930_p7 = scmp.ne.s32.totalorder %s539_s27, %s929_s8  ;;  %s1013_s9 = smov [#allocation10]  }
 0x19c   : > { %s933_s17 = sshll.u32 %s1013_s9, 4  ;;  %s934_s17 = int_to_ptr.vmem [resolvable:$false] %s933_s17 }
 0x19d   : > { %p931_p10 = pnand %p930_p7, %p1319_p3  ;;  %s935_s12 = scalar_lea.vmem %s934_s17, 128 }
 0x19e   : > { %p936_p13 = scmp.lt.s32.totalorder %s539_s27, %s934_s17  ;;  %p937_p0 = scmp.lt.s32.totalorder %s935_s12, %s929_s8 }
 0x19f   : > { %p932_p2 = pneg %p931_p10 }
 0x1a0   : > { %p938_p5 = por %p937_p0, %p936_p13 }
 0x1a2   : > { %p939_p9 = pnand %p938_p5, %p932_p2 }
 0x1a4   : > { %942 = shalt.err (!%p939_p9)
}
 0x1a5   : > { %s943_s6 = scalar_lea.hbm %s1254_s26, 64  ;;  %s947_s22 = scalar_lea.hbm %s1302_s5, 128 }
 0x1a6   : > { %p944_p12 = scmp.ne.s32.totalorder %s1254_s26, %s943_s6  ;;  %p948_p6 = scmp.lt.s32.totalorder %s1254_s26, %s1302_s5 }
 0x1a7   : > { %p949_p8 = scmp.lt.s32.totalorder %s947_s22, %s943_s6 }
 0x1a8   : > { %p945_p1 = pnand %p944_p12, %p1319_p3 }
 0x1a9   : > { %p950_p11 = por %p949_p8, %p948_p6 }
 0x1aa   : > { %p946_p4 = pneg %p945_p1 }
 0x1ac   : > { %p951_p7 = pnand %p950_p11, %p946_p4 }
 0x1ae   : > { %954 = shalt.err (!%p951_p7)
}
 0x1af   : > { %752 = dma.vmem_to_hbm [thread:$0]  (%p1319_p3), %s539_s27, 64, %s1254_s26, %s1227_s15  }
 0x1b0 PF: > { %s550_s16 = sand.u32 1, %s989_s18   ;;  %p1320_p10 = scmp.ne.s32.totalorder %s1309_s25, 0 }
 0x1b1   : > { %p1321_p2 = scmp.ge.s32.totalorder %s1001_s21, 2  ;;  %s551_s23 = scalar_lea.sflag [#allocation4], %s550_s16 }
 0x1b3   : > { %p765_p13 = pnand %p1321_p2, %p1320_p10 }
 0x1b5   : > { %p766_p0 = pneg %p765_p13 }
 0x1b7   : > { %980 = dma.done.wait (%p766_p0), %s551_s23, 64  }
 0x1b8   : > { %982 = vsyncadd (%p766_p0), %s551_s23, 4294967232  ;;  %s1322_s28 = sadd.s32 4294967294, %s1001_s21  }
 0x1b9   : > { %s559_s10 = sand.u32 1, %s1322_s28  }
 0x1ba   : > { %s560_s8 = scalar_lea.sflag [#allocation9], %s559_s10 }
 0x1bb   : > { %984 = dma.done.wait (%p766_p0), %s560_s8, 128  }
 0x1bc   : > { %986 = vsyncadd (%p766_p0), %s560_s8, 4294967168  ;;  %p23_p3 = scmp.ge.s32.totalorder %s1100_s30, 4   ;;  %s1323_s18 = smov %s993_s19 }
 0x1bd   : > { %s1324_s19 = smov %s997_s20  ;;  %s1325_s20 = smov %s1117_s13 }
 0x1be   : > { %s1326_s21 = smov %s1100_s30  ;;  %25 = sbr.rel (!%p23_p3) target bundleno = 8 (0x8), region = 113 }
 0x1c3   :  { %574 = vsyncpa [#allocation3], 1 }
 0x1c4   :  { %576 = vsyncpa [#allocation3 + $0x1], 1 }
 0x1c5   :  { %577 = vsyncpa [#allocation6], 1 }
 0x1c6   :  { %578 = vsyncpa [#allocation4], 1 }
 0x1c7   :  { %580 = vsyncpa [#allocation4 + $0x1], 1 }
 0x1c8   :  { %581 = vsyncpa [#allocation9], 1 }
 0x1c9   :  { %583 = vsyncpa [#allocation9 + $0x1], 1 }

</bundles_post_ra>
